<compile_context>
chip_gen: v5e
topology: v5e:2x2
jax: 0.10.0
libtpu: 0.0.40
codegen_flags: <defaults>
</compile_context>

<pallas_src>
import jax
import jax.numpy as jnp
from jax.experimental import pallas as pl
from jax.experimental.pallas import tpu as pltpu

_LANE = 128
# ~2 MiB per block: double-buffered input + output = 4 live buffers ~= 8 MiB,
# comfortably under v7x's 64 MiB VMEM while large enough to hit HBM roofline.
_TARGET_BLOCK_BYTES = 2 << 20


def _copy_kernel(x_ref, o_ref):
    # The whole "forward" is just passing the input through.
    o_ref[...] = x_ref[...]


def _sublane_multiple(dtype) -> int:
    # Sub-32-bit dtypes pack along sublanes: 8 rows (32-bit), 16 (16-bit), 32 (8-bit).
    itemsize = jnp.dtype(dtype).itemsize
    return max(8, 8 * (4 // max(1, itemsize)))


def _pick_2d_view(total: int) -> tuple[int, int]:
    """Pick a lane-dense (rows, cols) factorization of `total` (cols % 128 == 0)."""
    for cols in (8192, 4096, 2048, 1024, 512, 256, _LANE):
        if total % cols == 0:
            return total // cols, cols
    return -1, -1  # caller falls back to the padded path


def _pick_block_rows(rows: int, cols: int, itemsize: int, sub_mult: int) -> int:
    if rows <= sub_mult:
        return rows  # block covers the full dim -> always a legal block shape
    bytes_per_row = cols * itemsize
    target = max(1, _TARGET_BLOCK_BYTES // bytes_per_row)
    block_rows = min(rows, target)
    # Round down to the dtype-aware sublane multiple (keep >= sub_mult).
    return max(sub_mult, (block_rows // sub_mult) * sub_mult)


def _identity_copy_2d(x2d):
    rows, cols = x2d.shape
    itemsize = jnp.dtype(x2d.dtype).itemsize
    sub_mult = _sublane_multiple(x2d.dtype)
    block_rows = _pick_block_rows(rows, cols, itemsize, sub_mult)
    grid = (pl.cdiv(rows, block_rows),)

    return pl.pallas_call(
        _copy_kernel,
        out_shape=jax.ShapeDtypeStruct((rows, cols), x2d.dtype),
        grid_spec=pltpu.PrefetchScalarGridSpec(
            num_scalar_prefetch=0,
            grid=grid,
            in_specs=[pl.BlockSpec((block_rows, cols), lambda i: (i, 0))],
            out_specs=pl.BlockSpec((block_rows, cols), lambda i: (i, 0)),
        ),
        # Output reuses the input buffer: no extra HBM allocation; XLA may
        # elide the copy entirely when the input is donated.
        input_output_aliases={0: 0},
        compiler_params=pltpu.CompilerParams(
            # "parallel": lets v7x shard the copy across both TensorCores.
            dimension_semantics=("parallel",),
            # > v5e's 16 MiB default scoped limit, < v7x's 64 MiB physical VMEM.
            vmem_limit_bytes=32 << 20,
        ),
    )(x2d)


def identity_forward(*args):
    """Pallas identity: forward(*args) -> args[0], routed through one aliased,
    lane-dense HBM copy kernel.  (In production, simply `return args[0]`.)"""
    x = args[0]
    orig_shape = x.shape
    total = x.size

    if total == 0:
        return x

    rows, cols = _pick_2d_view(total)
    if rows > 0:
        # Clean path: free reshape to a lane-dense 2D view, no padding copies.
        out2d = _identity_copy_2d(x.reshape(rows, cols))
        return out2d.reshape(orig_shape)

    # Ragged fallback (element count not a multiple of 128): pad once, copy,
    # slice back.  Only hit for odd shapes; costs extra HBM passes.
    flat = x.reshape(-1)
    pad = (-total) % _LANE
    flat = jnp.pad(flat, (0, pad))
    out2d = _identity_copy_2d(flat.reshape(-1, _LANE))
    return out2d.reshape(-1)[:total].reshape(orig_shape)


if __name__ == "__main__":
    key = jax.random.PRNGKey(0)
    x = jax.random.normal(key, (2, 4, 16, 16), dtype=jnp.float32)  # NCHW

    y = identity_forward(x)
    jax.block_until_ready(y)

    assert y.shape == x.shape and y.dtype == x.dtype
    assert bool(jnp.all(y == x))
    print("KERNEL_OK")
</pallas_src>

<mosaic_0001>
module attributes {stable_mosaic.version = 11 : i64} {
  func.func @_copy_kernel(%arg0: i32, %arg1: memref<1x2048xf32, #tpu.memory_space<vmem>>, %arg2: memref<1x2048xf32, #tpu.memory_space<vmem>>) attributes {dimension_semantics = [#tpu.dimension_semantics<parallel>], iteration_bounds = array<i64: 1>, scalar_prefetch = 0 : i64, scratch_operands = 0 : i64, tpu.core_type = #tpu.core_type<tc>, window_params = [{transform_indices = @transform_0, window_bounds = array<i64: 1, 2048>}, {transform_indices = @transform_1, window_bounds = array<i64: 1, 2048>}]} {
    %c0 = arith.constant 0 : index
    %c0_0 = arith.constant 0 : index
    %0 = vector.load %arg1[%c0, %c0_0] : memref<1x2048xf32, #tpu.memory_space<vmem>>, vector<1x2048xf32>
    %c0_1 = arith.constant 0 : index
    %c0_2 = arith.constant 0 : index
    %1 = vector.load %arg2[%c0_1, %c0_2] : memref<1x2048xf32, #tpu.memory_space<vmem>>, vector<1x2048xf32>
    tpu.vector_store %arg2[%c0_1, %c0_2], %0 {strides = array<i32>} : memref<1x2048xf32, #tpu.memory_space<vmem>>, vector<1x2048xf32>,
    return
  }
  func.func @transform_0(%arg0: i32) -> (i32, i32) {
    %c0_i32 = arith.constant 0 : i32
    %c0_i32_0 = arith.constant 0 : i32
    return %arg0, %c0_i32 : i32, i32
  }
  func.func @transform_1(%arg0: i32) -> (i32, i32) {
    %c0_i32 = arith.constant 0 : i32
    %c0_i32_0 = arith.constant 0 : i32
    return %arg0, %c0_i32 : i32, i32
  }
}

</mosaic_0001>

<bundles_post_ra>
// kernel: tpu_custom_call.1
= control target key start
LH: loop header
LB: loop body
LE: loop exit
PB: predicated region body
PF: predicated region fallthrough
CT: control target
= control target key end

     0   :  { %6 = vsyncpa [#allocation3], 0  ;;  %s116_s0 = inlined_call_operand.hbm [shape: f32[1,2048], index: 0, kind: input, shape index: {}, may-alias: {0,1}]   ;;  %s117_s1 = inlined_call_operand.hbm [shape: f32[1,2048], index: 1, kind: output, shape index: {}, may-alias: {0,1}]  }
   0x1   :  { %7 = vsyncpa [#allocation4], 0  ;;  %s13_s8 = sshll.u32 %s116_s0, 4  ;;  %s98_s9 = smov [#allocation2]   ;;  %s14_s8 = int_to_ptr.hbm [resolvable:$true] %s13_s8 }
   0x2   :  { %s15_s10 = sshll.u32 %s98_s9, 4  ;;  %s16_s10 = int_to_ptr.vmem [resolvable:$true] %s15_s10 }
   0x3   :  { %18 = dma.hbm_to_vmem [thread:$0]  %s14_s8, 256, %s16_s10, [#allocation3]  }
   0x4   :  { %94 = dma.done.wait [#allocation3], 256  }
   0x5   :  { %95 = vsyncadd [#allocation3], 4294967040  ;;  %s99_s11 = smov [#allocation5]   ;;  %s34_s15 = sshll.u32 %s117_s1, 4  ;;  %v23_v0 = vld [vmem:[#allocation2] sm:$0xff]  ;;  %v24_v1 = vld [vmem:[#allocation2 + $0x8] sm:$0xff]  ;;  %s35_s15 = int_to_ptr.hbm [resolvable:$true] %s34_s15 }
   0x6   :  { %s32_s12 = sshll.u32 %s99_s11, 4  ;;  %25 = vst [vmem:[#allocation5] sm:$0xff] %v23_v0  ;;  %s33_s12 = int_to_ptr.vmem [resolvable:$true] %s32_s12 }
   0x7   :  { %26 = vst [vmem:[#allocation5 + $0x8] sm:$0xff] %v24_v1 }
   0x8   :  { %37 = dma.vmem_to_hbm [thread:$0]  %s33_s12, 256, %s35_s15, [#allocation4]  }
   0x9   :  { %96 = dma.done.wait [#allocation4], 256  }
   0xa   :  { %97 = vsyncadd [#allocation4], 4294967040 }
   0xb   :  { %42 = vsyncpa [#allocation3], 1 }
   0xc   :  { %43 = vsyncpa [#allocation4], 1 }

</bundles_post_ra>
